<compile_context>
chip_gen: v6e
topology: v6e:2x2x1
jax: 0.10.0
libtpu: 0.0.40
codegen_flags: <defaults>
</compile_context>

<pallas_src>
import functools

import jax
import jax.numpy as jnp
from jax.experimental import pallas as pl
from jax.experimental.pallas import tpu as pltpu


LAMBDA = 1.0  # self.Lambda in the PyTorch module

# ~2 MiB f32 per block.  With 2 inputs + 1 output, each double-buffered,
# that is ~12 MiB of VMEM — comfortably under the scoped default on every
# generation (including v7x's 64 MiB physical VMEM).
_TILE_BUDGET_ELEMS = (2 * 1024 * 1024) // 4


def _gumbel_softmax_kernel(x_ref, u_ref, o_ref, *, lb: float, lam: float):
    x = x_ref[...].astype(jnp.float32)
    u = u_ref[...].astype(jnp.float32)

    # -log(u + lb) > 0 because u in [0, 1) and (u + lb) < 1 in f32.
    neg_log_u = -jnp.log(u + lb)

    if lam == 1.0:
        # Fast path (Lambda == 1): softmax is scale/shift invariant, so
        #   softmax(log(x) - log(-log(u + lb))) == row-normalize(x / (-log(u+lb)))
        # Padded lanes (x == 0) contribute exactly 0 to the denominator.
        r = x / neg_log_u
        denom = jnp.sum(r, axis=-1, keepdims=True)
        o_ref[...] = (r / denom).astype(o_ref.dtype)
    else:
        # General path: numerically stable softmax over the last axis.
        logits = (jnp.log(x) - jnp.log(neg_log_u)) * (1.0 / lam)
        m = jnp.max(logits, axis=-1, keepdims=True)
        e = jnp.exp(logits - m)
        denom = jnp.sum(e, axis=-1, keepdims=True)
        o_ref[...] = (e / denom).astype(o_ref.dtype)


def _round_up(v: int, m: int) -> int:
    return ((v + m - 1) // m) * m


def gumbel_softmax(x: jax.Array, key: jax.Array, lb: float = 1e-10,
                   lam: float = LAMBDA) -> jax.Array:
    """x: (B, N) positive values; Gumbel-softmax over the last axis.

    `key` is a jax.random key used to draw the uniform noise (the equivalent
    of torch.rand in the reference module).
    """
    B, N = x.shape

    # Lane-dense layout: pad classes up to a multiple of 128 so output stores
    # are full-width `vst` rather than masked partial stores.
    N_pad = _round_up(max(N, 128), 128)

    # Batch tile: largest multiple of 8 that keeps one block near the budget,
    # but never larger than the (padded) batch.
    tb = (_TILE_BUDGET_ELEMS // N_pad) // 8 * 8
    tb = max(8, min(tb if tb > 0 else 8, _round_up(B, 8)))
    B_pad = _round_up(B, tb)

    # Padded rows/lanes carry x == 0: they contribute 0 to every real row's
    # softmax denominator and are sliced off before returning.
    x_p = jnp.zeros((B_pad, N_pad), jnp.float32).at[:B, :N].set(
        x.astype(jnp.float32))

    # Uniform [0, 1) Gumbel noise source (same role as torch.rand(x.size())).
    u = jax.random.uniform(key, (B_pad, N_pad), dtype=jnp.float32)

    kernel = functools.partial(_gumbel_softmax_kernel,
                               lb=float(lb), lam=float(lam))

    out = pl.pallas_call(
        kernel,
        out_shape=jax.ShapeDtypeStruct((B_pad, N_pad), jnp.float32),
        grid=(B_pad // tb,),
        in_specs=[pl.BlockSpec((tb, N_pad), lambda i: (i, 0)),
                  pl.BlockSpec((tb, N_pad), lambda i: (i, 0))],
        out_specs=pl.BlockSpec((tb, N_pad), lambda i: (i, 0)),
        compiler_params=pltpu.CompilerParams(
            # Rows are fully independent -> let the grid shard across
            # TensorCores on v7x; a no-op on single-core v5e/v6e.
            dimension_semantics=("parallel",)),
    )(x_p, u)

    return out[:B, :N]


if __name__ == "__main__":
    key = jax.random.PRNGKey(0)
    kx, kn = jax.random.split(key)

    B, N = 16, 128  # (batch, classes)

    # GumbellSoftmax expects positive, probability-like inputs (log(x) is used).
    x = jax.random.uniform(kx, (B, N), dtype=jnp.float32,
                           minval=0.05, maxval=1.0)

    out = gumbel_softmax(x, kn)
    out = jax.block_until_ready(out)

    # Shape / dtype / distribution sanity checks.
    assert out.shape == (B, N) and out.dtype == jnp.float32
    row_sums = jnp.sum(out, axis=-1)
    assert jnp.allclose(row_sums, jnp.ones_like(row_sums), atol=1e-5)
    assert bool(jnp.all(jnp.isfinite(out))) and bool(jnp.all(out >= 0.0))

    # Cross-check against a pure-JAX reference using the identical noise draw
    # (shapes here are already tile-aligned, so the wrapper pads nothing).
    u_ref = jax.random.uniform(kn, (B, N), dtype=jnp.float32)
    ref = jax.nn.softmax(jnp.log(x) - jnp.log(-jnp.log(u_ref + 1e-10)), axis=-1)
    assert jnp.allclose(out, ref, atol=1e-5, rtol=1e-4)

    print("KERNEL_OK")
</pallas_src>

<mosaic_0001>
module attributes {stable_mosaic.version = 11 : i64} {
  func.func @_gumbel_softmax_kernel(%arg0: i32, %arg1: memref<16x128xf32, #tpu.memory_space<vmem>>, %arg2: memref<16x128xf32, #tpu.memory_space<vmem>>, %arg3: memref<16x128xf32, #tpu.memory_space<vmem>>) attributes {dimension_semantics = [#tpu.dimension_semantics<parallel>], iteration_bounds = array<i64: 1>, scalar_prefetch = 0 : i64, scratch_operands = 0 : i64, tpu.core_type = #tpu.core_type<tc>, window_params = [{transform_indices = @transform_0, window_bounds = array<i64: 16, 128>}, {transform_indices = @transform_1, window_bounds = array<i64: 16, 128>}, {transform_indices = @transform_2, window_bounds = array<i64: 16, 128>}]} {
    %c0 = arith.constant 0 : index
    %c0_0 = arith.constant 0 : index
    %0 = vector.load %arg1[%c0, %c0_0] : memref<16x128xf32, #tpu.memory_space<vmem>>, vector<16x128xf32>
    %c0_1 = arith.constant 0 : index
    %c0_2 = arith.constant 0 : index
    %1 = vector.load %arg2[%c0_1, %c0_2] : memref<16x128xf32, #tpu.memory_space<vmem>>, vector<16x128xf32>
    %cst = arith.constant 1.000000e-10 : f32
    %2 = vector.broadcast %cst : f32 to vector<16x128xf32>
    %3 = arith.addf %1, %2 : vector<16x128xf32>
    %4 = math.log %3 : vector<16x128xf32>
    %cst_3 = arith.constant 0.000000e+00 : f32
    %5 = vector.broadcast %cst_3 : f32 to vector<16x128xf32>
    %6 = arith.subf %5, %4 : vector<16x128xf32>
    %7 = arith.divf %0, %6 : vector<16x128xf32>
    %cst_4 = arith.constant dense<0.000000e+00> : vector<16xf32>
    %8 = vector.multi_reduction <add>, %7, %cst_4 [1] : vector<16x128xf32> to vector<16xf32>
    %9 = vector.shape_cast %8 : vector<16xf32> to vector<16x1xf32>
    %10 = vector.broadcast %9 : vector<16x1xf32> to vector<16x128xf32>
    %11 = arith.divf %7, %10 : vector<16x128xf32>
    %c0_5 = arith.constant 0 : index
    %c0_6 = arith.constant 0 : index
    %12 = vector.load %arg3[%c0_5, %c0_6] : memref<16x128xf32, #tpu.memory_space<vmem>>, vector<16x128xf32>
    tpu.vector_store %arg3[%c0_5, %c0_6], %11 {strides = array<i32>} : memref<16x128xf32, #tpu.memory_space<vmem>>, vector<16x128xf32>,
    return
  }
  func.func @transform_0(%arg0: i32) -> (i32, i32) {
    %c0_i32 = arith.constant 0 : i32
    %c0_i32_0 = arith.constant 0 : i32
    return %arg0, %c0_i32 : i32, i32
  }
  func.func @transform_1(%arg0: i32) -> (i32, i32) {
    %c0_i32 = arith.constant 0 : i32
    %c0_i32_0 = arith.constant 0 : i32
    return %arg0, %c0_i32 : i32, i32
  }
  func.func @transform_2(%arg0: i32) -> (i32, i32) {
    %c0_i32 = arith.constant 0 : i32
    %c0_i32_0 = arith.constant 0 : i32
    return %arg0, %c0_i32 : i32, i32
  }
}

</mosaic_0001>

<bundles_post_ra>
// kernel: tpu_custom_call.1
= control target key start
LH: loop header
LB: loop body
LE: loop exit
PB: predicated region body
PF: predicated region fallthrough
CT: control target
= control target key end

     0   :  { %7 = vsyncpa [#allocation3], 0  ;;  %s205_s0 = inlined_call_operand.hbm [shape: f32[16,128], index: 0, kind: input, shape index: {}]   ;;  %s206_s1 = inlined_call_operand.hbm [shape: f32[16,128], index: 1, kind: input, shape index: {}]   ;;  %s207_s2 = inlined_call_operand.hbm [shape: f32[16,128], index: 2, kind: output, shape index: {}]  }
   0x1   :  { %8 = vsyncpa [#allocation6], 0 }
   0x2   :  { %9 = vsyncpa [#allocation4], 0  ;;  %s167_s9 = smov [#allocation2]  }
   0x3   :  { %s15_s10 = sshll.u32 %s167_s9, 4  ;;  %s16_s10 = int_to_ptr.vmem [resolvable:$true] %s15_s10 }
   0x4   :  { %s109_s11 = scalar_lea.vmem %s16_s10, 256  ;;  %p114_p1 = scmp.lt.s32.totalorder %s16_s10, %s16_s10 }
   0x5   :  { %p110_p0 = scmp.ne.s32.totalorder %s16_s10, %s109_s11  ;;  %p115_p2 = scmp.lt.s32.totalorder %s109_s11, %s109_s11 }
   0x7   :  { %p116_p3 = por %p115_p2, %p114_p1 }
   0x9   :  { %p117_p4 = pnand %p116_p3, %p110_p0 }
   0xb   :  { %120 = shalt.err (!%p117_p4)
}
   0xc   :  { %s168_s12 = smov 128   ;;  %s169_s13 = smov 8  }
   0xd   :  { %21 = dma.hbm_to_vmem [thread:$0]  %s205_s0, 256, %s16_s10, [#allocation3], %s168_s12, %s168_s12, %s169_s13  }
   0xe   :  { %s170_s16 = smov [#allocation5]  }
   0xf   :  { %s27_s17 = sshll.u32 %s170_s16, 4  ;;  %s28_s17 = int_to_ptr.vmem [resolvable:$true] %s27_s17 }
  0x10   :  { %s129_s18 = scalar_lea.vmem %s28_s17, 256  ;;  %p134_p6 = scmp.lt.s32.totalorder %s28_s17, %s28_s17 }
  0x11   :  { %p130_p5 = scmp.ne.s32.totalorder %s28_s17, %s129_s18  ;;  %p135_p7 = scmp.lt.s32.totalorder %s129_s18, %s129_s18 }
  0x13   :  { %p136_p8 = por %p135_p7, %p134_p6 }
  0x15   :  { %p137_p9 = pnand %p136_p8, %p130_p5 }
  0x17   :  { %140 = shalt.err (!%p137_p9)
}
  0x18   :  { %33 = dma.hbm_to_vmem [thread:$0]  %s206_s1, 256, %s28_s17, [#allocation6], %s168_s12, %s168_s12, %s169_s13  }
  0x19   :  { %161 = dma.done.wait [#allocation3], 256  }
  0x1a   :  { %162 = vsyncadd [#allocation3], 4294967040 }
  0x1b   :  { %163 = dma.done.wait [#allocation6], 256  }
  0x1c   :  { %164 = vsyncadd [#allocation6], 4294967040  ;;  %v42_v0 = vld [vmem:[#allocation5] sm:$0xff]  ;;  %v43_v2 = vld [vmem:[#allocation5 + $0x8] sm:$0xff]  ;;  %s171_s0 = smov [#allocation7]  }
  0x1d   :  { %v44_v1 = vadd.f32 1e-10, %v42_v0  ;;  %v45_v3 = vadd.f32 1e-10, %v43_v2  ;;  %v40_v10 = vld [vmem:[#allocation2] sm:$0xff]  ;;  %v41_v12 = vld [vmem:[#allocation2 + $0x8] sm:$0xff] }
  0x1e   :  { %s71_s1 = sshll.u32 %s171_s0, 4  ;;  %s72_s1 = int_to_ptr.vmem [resolvable:$true] %s71_s1 }
  0x1f   :  { %89 = vlog2.f32 %v44_v1  ;;  %s141_s21 = scalar_lea.vmem %s72_s1, 256  ;;  %p146_p11 = scmp.lt.s32.totalorder %s72_s1, %s72_s1 }
  0x20   :  { %91 = vlog2.f32 %v45_v3  ;;  %p142_p10 = scmp.ne.s32.totalorder %s72_s1, %s141_s21  ;;  %p147_p12 = scmp.lt.s32.totalorder %s141_s21, %s141_s21 }
  0x22   :  { %p148_p13 = por %p147_p12, %p146_p11 }
  0x24   :  { %p149_p0 = pnand %p148_p13, %p142_p10 }
  0x2c   :  { %v90_v4 = vpop.eup %89 }
  0x2d   :  { %v92_v5 = vpop.eup %91  ;;  %v47_v6 = vmul.f32 0.6931472, %v90_v4 }
  0x2e   :  { %v49_v7 = vmul.f32 0.6931472, %v92_v5 }
  0x2f   :  { %v50_v8 = vsub.f32 0.0, %v47_v6 }
  0x30   :  { %v51_v9 = vsub.f32 0.0, %v49_v7 }
  0x31   :  { %93 = vrcp.f32 %v50_v8 }
  0x32   :  { %95 = vrcp.f32 %v51_v9 }
  0x3e   :  { %v94_v11 = vpop.eup %93 }
  0x3f   :  { %v96_v13 = vpop.eup %95  ;;  %v53_v14 = vmul.f32 %v94_v11, %v40_v10 }
  0x40   :  { %v55_v15 = vmul.f32 %v96_v13, %v41_v12 }
  0x41   :  { %56 = vadd.xlane.f32.xlu0 %v53_v14 }
  0x45   :  { %58 = vadd.xlane.f32.xlu0 %v55_v15 }
  0xca   :  { %v57_v16 = vpop.xlane.xlu0 %56 }
  0xcb   :  { %97 = vrcp.f32 %v57_v16 }
  0xce   :  { %v59_v17 = vpop.xlane.xlu0 %58 }
  0xcf   :  { %99 = vrcp.f32 %v59_v17 }
  0xd8   :  { %v98_v18 = vpop.eup %97 }
  0xd9   :  { %v61_v19 = vmul.f32 %v98_v18, %v53_v14 }
  0xdb   :  { %64 = vst [vmem:[#allocation7] sm:$0xff] %v61_v19 }
  0xdc   :  { %v100_v20 = vpop.eup %99 }
  0xdd   :  { %v63_v21 = vmul.f32 %v100_v20, %v55_v15 }
  0xdf   :  { %65 = vst [vmem:[#allocation7 + $0x8] sm:$0xff] %v63_v21 }
  0xe0   :  { %152 = shalt.err (!%p149_p0)
}
  0xe1   :  { %77 = dma.vmem_to_hbm [thread:$0]  %s72_s1, 256, %s207_s2, [#allocation4], %s168_s12, %s168_s12, %s169_s13  }
  0xe2   :  { %165 = dma.done.wait [#allocation4], 256  }
  0xe3   :  { %166 = vsyncadd [#allocation4], 4294967040 }
  0xe4   :  { %81 = vsyncpa [#allocation3], 1 }
  0xe5   :  { %82 = vsyncpa [#allocation6], 1 }
  0xe6   :  { %83 = vsyncpa [#allocation4], 1 }

</bundles_post_ra>
